<compile_context>
chip_gen: v7x
topology: tpu7x:2x2x1
jax: 0.10.0
libtpu: 0.0.40
codegen_flags: <defaults>
</compile_context>

<pallas_src>
import jax
import jax.numpy as jnp
from jax.experimental import pallas as pl
from jax.experimental.pallas import tpu as pltpu


def _round_up(a: int, b: int) -> int:
    return ((a + b - 1) // b) * b


def head_kernel(x_ref, w_ref, b_ref, o_ref):
    """One (TB, T_pad) output tile; K (feature) reduction on grid axis 1.

    The output block index is constant across k, so o_ref stays VMEM-resident
    over the reduction and doubles as the f32 accumulator (no scratch needed).
    """
    k = pl.program_id(1)

    @pl.when(k == 0)
    def _init():
        o_ref[...] = jnp.zeros_like(o_ref)

    # bf16 x bf16 -> f32 accumulation on the MXU.
    o_ref[...] += jnp.dot(x_ref[...], w_ref[...],
                          preferred_element_type=jnp.float32)

    @pl.when(k == pl.num_programs(1) - 1)
    def _finalize():
        logits = o_ref[...] + b_ref[...]          # bias is f32, (1, T_pad)
        m = jnp.max(logits, axis=-1, keepdims=True)
        e = jnp.exp(logits - m)
        s = jnp.sum(e, axis=-1, keepdims=True)
        # Exact normalization: runs once per batch tile, essentially free,
        # and rows sum to 1 within f32 (no approx reciprocal drift).
        o_ref[...] = e / s


def make_head(weight, bias, *, compute_dtype=jnp.bfloat16, tb=256, tk=512,
              min_pallas_elems=1 << 20, force_pallas=False):
    """Precompute padded/transposed parameters once; return forward(x).

    weight: (n_targets, output_size)  (PyTorch nn.Linear layout)
    bias:   (n_targets,)
    """
    T, D = weight.shape

    # ---- chip-aware VMEM budget -------------------------------------------
    try:
        vmem_cap = int(pltpu.get_tpu_info().vmem_capacity_bytes)
    except Exception:
        vmem_cap = 64 << 20                      # conservative (v7x-sized)
    vmem_budget = int(vmem_cap * 0.8)            # ~51 MiB v7x / ~102 MiB v5e,v6e

    x_sz = jnp.dtype(compute_dtype).itemsize
    w_sz = x_sz
    sub = 16 if x_sz < 4 else 8                  # bf16 sublane packing -> 16 rows

    # ---- lane-dense target padding (full-width vst, not masked stores) ----
    T_pad = _round_up(T, 128)

    # ---- K tile: keep the whole weight VMEM-resident when it fits ---------
    D128 = _round_up(D, 128)
    if D128 * T_pad * w_sz <= 12 << 20:
        TK = D128                                # single K step: constant block
    else:                                        # index -> weight fetched once
        TK = min(tk, D128)
        # Shrink TK first when a T_pad-wide weight slab would blow the budget.
        while TK > 128 and 2 * TK * T_pad * w_sz > vmem_budget // 2:
            TK //= 2
    D_pad = _round_up(D, TK)

    # ---- parameters: transpose / pad / cast ONCE at setup time ------------
    w_p = jnp.pad(weight.T.astype(compute_dtype),
                  ((0, D_pad - D), (0, T_pad - T)))
    b_p = jnp.pad(bias.astype(jnp.float32), (0, T_pad - T),
                  constant_values=-1e30).reshape(1, T_pad)

    def _vmem_bytes(TB):
        return (2 * TB * TK * x_sz               # x: double-buffered
                + 2 * TK * T_pad * w_sz          # weight: double-buffered
                + 2 * 1 * T_pad * 4              # bias
                + 2 * TB * T_pad * 4)            # f32 output / accumulator

    def forward(x):
        B, Dx = x.shape
        assert Dx == D, "feature dim mismatch"

        if not force_pallas and B * D * T_pad < min_pallas_elems:
            # Tiny head: XLA fusion beats per-step Pallas overhead + padding.
            return jax.nn.softmax(x @ weight.T + bias, axis=1)

        # Batch tile: sublane-aligned for the compute dtype, VMEM-capped.
        TB = min(tb, _round_up(B, sub))
        while TB > sub and _vmem_bytes(TB) > vmem_budget:
            TB = max(sub, TB // 2)
        B_pad = _round_up(B, TB)

        x_p = x.astype(compute_dtype)
        if (B_pad, D_pad) != (B, D):
            x_p = jnp.pad(x_p, ((0, B_pad - B), (0, D_pad - D)))

        grid = (B_pad // TB, D_pad // TK)
        n_w_fetch = (B_pad // TB) if grid[1] > 1 else 1
        vmem_limit = int(min(max(int(_vmem_bytes(TB) * 1.25), 16 << 20),
                             vmem_budget))

        cost = pl.CostEstimate(
            flops=2 * B_pad * D_pad * T_pad,
            transcendentals=B_pad * T_pad,
            bytes_accessed=(x_sz * B_pad * D_pad
                            + w_sz * n_w_fetch * D_pad * T_pad
                            + 4 * T_pad
                            + 4 * B_pad * T_pad),
        )

        # TODO(synk): if the K grid axis is active for very large output_size
        # and DMA is still exposed, sweep pipeline_mode=pl.Buffered(3) on the
        # x BlockSpec (costs one extra TB*TK buffer of VMEM).
        out = pl.pallas_call(
            head_kernel,
            out_shape=jax.ShapeDtypeStruct((B_pad, T_pad), jnp.float32),
            grid_spec=pltpu.PrefetchScalarGridSpec(
                num_scalar_prefetch=0,
                grid=grid,
                in_specs=[
                    pl.BlockSpec((TB, TK), lambda i, k: (i, k)),      # x tile
                    pl.BlockSpec((TK, T_pad), lambda i, k: (k, 0)),   # weight
                    pl.BlockSpec((1, T_pad), lambda i, k: (0, 0)),    # bias
                ],
                out_specs=pl.BlockSpec((TB, T_pad), lambda i, k: (i, 0)),
            ),
            compiler_params=pltpu.CompilerParams(
                dimension_semantics=("parallel", "arbitrary"),
                vmem_limit_bytes=vmem_limit,
            ),
            cost_estimate=cost,
        )(x_p, w_p, b_p)

        return out[:B, :T]

    return jax.jit(forward)


def main_model_stub(x):
    # TODO(synk): `main_model` is an injected, arbitrary submodule (unknown
    # architecture) — modeled here as identity producing pooled features.
    return x


if __name__ == "__main__":
    B, OUTPUT_SIZE, N_TARGETS = 2, 32, 4

    key = jax.random.PRNGKey(0)
    kx, kw, kb = jax.random.split(key, 3)

    # PyTorch Linear parameter shapes: weight (n_targets, output_size), bias (n_targets,).
    x = jax.random.normal(kx, (B, OUTPUT_SIZE), dtype=jnp.float32)
    weight = jax.random.normal(kw, (N_TARGETS, OUTPUT_SIZE), dtype=jnp.float32) * 0.1
    bias = jax.random.normal(kb, (N_TARGETS,), dtype=jnp.float32) * 0.1

    feats = main_model_stub(x)

    # Force the Pallas path at this demo size (auto mode would take the plain
    # XLA fallback, which is strictly faster for shapes this small).
    head = make_head(weight, bias, force_pallas=True)
    out = jax.block_until_ready(head(feats))

    # Reference in plain f32 JAX (tolerance accounts for bf16 inputs).
    ref = jax.nn.softmax(feats @ weight.T + bias, axis=1)
    assert out.shape == (B, N_TARGETS)
    assert jnp.allclose(out, ref, atol=2e-2, rtol=2e-2), "mismatch vs reference"
    assert jnp.allclose(jnp.sum(out, axis=1), 1.0, atol=1e-4)

    # The auto path (small-shape fallback) must match exactly.
    head_auto = make_head(weight, bias)
    out_auto = jax.block_until_ready(head_auto(feats))
    assert jnp.allclose(out_auto, ref, atol=1e-5)

    print("KERNEL_OK")
</pallas_src>

<mosaic_0001>
module attributes {stable_mosaic.version = 11 : i64} {
  func.func @head_kernel(%arg0: i32, %arg1: i32, %arg2: memref<16x128xbf16, #tpu.memory_space<vmem>>, %arg3: memref<128x128xbf16, #tpu.memory_space<vmem>>, %arg4: memref<1x128xf32, #tpu.memory_space<vmem>>, %arg5: memref<16x128xf32, #tpu.memory_space<vmem>>) attributes {dimension_semantics = [#tpu.dimension_semantics<parallel>, #tpu.dimension_semantics<arbitrary>], iteration_bounds = array<i64: 1, 1>, scalar_prefetch = 0 : i64, scratch_operands = 0 : i64, tpu.core_type = #tpu.core_type<tc>, window_params = [{transform_indices = @transform_0, window_bounds = array<i64: 16, 128>}, {transform_indices = @transform_1, window_bounds = array<i64: 128, 128>}, {pipeline_mode = #tpu.pipeline_mode<synchronous>, transform_indices = @transform_2, window_bounds = array<i64: 1, 128>}, {transform_indices = @transform_3, window_bounds = array<i64: 16, 128>}]} {
    %c0_i32 = arith.constant 0 : i32
    %0 = arith.cmpi eq, %arg1, %c0_i32 : i32
    %1 = arith.extui %0 : i1 to i32
    %c0_i32_0 = arith.constant 0 : i32
    %2 = arith.cmpi ne, %1, %c0_i32_0 : i32
    scf.if %2 {
      %cst_10 = arith.constant 0.000000e+00 : f32
      %12 = vector.broadcast %cst_10 : f32 to vector<16x128xf32>
      %c0_11 = arith.constant 0 : index
      %c0_12 = arith.constant 0 : index
      %13 = vector.load %arg5[%c0_11, %c0_12] : memref<16x128xf32, #tpu.memory_space<vmem>>, vector<16x128xf32>
      tpu.vector_store %arg5[%c0_11, %c0_12], %12 {strides = array<i32>} : memref<16x128xf32, #tpu.memory_space<vmem>>, vector<16x128xf32>,
    } else {
    }
    %c0 = arith.constant 0 : index
    %c0_1 = arith.constant 0 : index
    %3 = vector.load %arg5[%c0, %c0_1] : memref<16x128xf32, #tpu.memory_space<vmem>>, vector<16x128xf32>
    %c0_2 = arith.constant 0 : index
    %c0_3 = arith.constant 0 : index
    %4 = vector.load %arg2[%c0_2, %c0_3] : memref<16x128xbf16, #tpu.memory_space<vmem>>, vector<16x128xbf16>
    %c0_4 = arith.constant 0 : index
    %c0_5 = arith.constant 0 : index
    %5 = vector.load %arg3[%c0_4, %c0_5] : memref<128x128xbf16, #tpu.memory_space<vmem>>, vector<128x128xbf16>
    %cst = arith.constant dense<0.000000e+00> : vector<16x128xf32>
    %6 = tpu.matmul %4, %5, %cst {dimension_numbers = #tpu.dot_dimension_numbers<[1], [0], [0], [1], [0, 0, 1, 1], [], []>} : vector<16x128xbf16>, vector<128x128xbf16>, vector<16x128xf32> -> vector<16x128xf32>
    %7 = arith.addf %3, %6 : vector<16x128xf32>
    %c0_6 = arith.constant 0 : index
    %c0_7 = arith.constant 0 : index
    %8 = vector.load %arg5[%c0_6, %c0_7] : memref<16x128xf32, #tpu.memory_space<vmem>>, vector<16x128xf32>
    tpu.vector_store %arg5[%c0_6, %c0_7], %7 {strides = array<i32>} : memref<16x128xf32, #tpu.memory_space<vmem>>, vector<16x128xf32>,
    %c0_i32_8 = arith.constant 0 : i32
    %9 = arith.cmpi eq, %arg1, %c0_i32_8 : i32
    %10 = arith.extui %9 : i1 to i32
    %c0_i32_9 = arith.constant 0 : i32
    %11 = arith.cmpi ne, %10, %c0_i32_9 : i32
    scf.if %11 {
      %c0_10 = arith.constant 0 : index
      %c0_11 = arith.constant 0 : index
      %12 = vector.load %arg5[%c0_10, %c0_11] : memref<16x128xf32, #tpu.memory_space<vmem>>, vector<16x128xf32>
      %c0_12 = arith.constant 0 : index
      %c0_13 = arith.constant 0 : index
      %13 = vector.load %arg4[%c0_12, %c0_13] : memref<1x128xf32, #tpu.memory_space<vmem>>, vector<1x128xf32>
      %14 = vector.broadcast %13 : vector<1x128xf32> to vector<16x128xf32>
      %15 = arith.addf %12, %14 : vector<16x128xf32>
      %cst_14 = arith.constant dense<0xFF800000> : vector<16xf32>
      %16 = vector.multi_reduction <maximumf>, %15, %cst_14 [1] : vector<16x128xf32> to vector<16xf32>
      %17 = vector.shape_cast %16 : vector<16xf32> to vector<16x1xf32>
      %18 = vector.broadcast %17 : vector<16x1xf32> to vector<16x128xf32>
      %19 = arith.subf %15, %18 : vector<16x128xf32>
      %20 = math.exp %19 : vector<16x128xf32>
      %cst_15 = arith.constant dense<0.000000e+00> : vector<16xf32>
      %21 = vector.multi_reduction <add>, %20, %cst_15 [1] : vector<16x128xf32> to vector<16xf32>
      %22 = vector.shape_cast %21 : vector<16xf32> to vector<16x1xf32>
      %23 = vector.broadcast %22 : vector<16x1xf32> to vector<16x128xf32>
      %24 = arith.divf %20, %23 : vector<16x128xf32>
      %c0_16 = arith.constant 0 : index
      %c0_17 = arith.constant 0 : index
      %25 = vector.load %arg5[%c0_16, %c0_17] : memref<16x128xf32, #tpu.memory_space<vmem>>, vector<16x128xf32>
      tpu.vector_store %arg5[%c0_16, %c0_17], %24 {strides = array<i32>} : memref<16x128xf32, #tpu.memory_space<vmem>>, vector<16x128xf32>,
    } else {
    }
    return
  }
  func.func @transform_0(%arg0: i32, %arg1: i32) -> (i32, i32) {
    %c0_i32 = arith.constant 0 : i32
    return %arg0, %arg1 : i32, i32
  }
  func.func @transform_1(%arg0: i32, %arg1: i32) -> (i32, i32) {
    %c0_i32 = arith.constant 0 : i32
    %c0_i32_0 = arith.constant 0 : i32
    return %arg1, %c0_i32 : i32, i32
  }
  func.func @transform_2(%arg0: i32, %arg1: i32) -> (i32, i32) {
    %c0_i32 = arith.constant 0 : i32
    %c0_i32_0 = arith.constant 0 : i32
    %c0_i32_1 = arith.constant 0 : i32
    return %c0_i32, %c0_i32_0 : i32, i32
  }
  func.func @transform_3(%arg0: i32, %arg1: i32) -> (i32, i32) {
    %c0_i32 = arith.constant 0 : i32
    %c0_i32_0 = arith.constant 0 : i32
    return %arg0, %c0_i32 : i32, i32
  }
}

</mosaic_0001>

<bundles_post_ra>
// kernel: forward.1
= control target key start
LH: loop header
LB: loop body
LE: loop exit
PB: predicated region body
PF: predicated region fallthrough
CT: control target
= control target key end

     0   :  { %8 = vsyncpa [#allocation3], 0  ;;  %s278_s12 = smov [#allocation2]   ;;  %s327_s0 = inlined_call_operand.vmem [shape: bf16[16,128], index: 0, kind: input, shape index: {}]   ;;  %s328_s1 = inlined_call_operand.hbm [shape: bf16[128,128], index: 1, kind: input, shape index: {}]   ;;  %s329_s2 = inlined_call_operand.vmem [shape: f32[1,128], index: 2, kind: input, shape index: {}]   ;;  %s330_s3 = inlined_call_operand.vmem [shape: f32[16,128], index: 3, kind: output, shape index: {}]  }
   0x1   :  { %s16_s13 = sshll.u32 %s278_s12, 4  ;;  %s254_s16 = scalar_lea.hbm %s328_s1, 1024  ;;  %s17_s13 = int_to_ptr.vmem [resolvable:$true] %s16_s13 }
   0x2   :  { %p255_p0 = scmp.ne.s32.totalorder %s328_s1, %s254_s16  ;;  %p258_p1 = scmp.lt.u32.totalorder %s254_s16, %s328_s1 }
   0x4   :  { %p260_p2 = pnand %p258_p1, %p255_p0 }
   0x6   :  { %263 = shalt.err (!%p260_p2)
}
   0x7   :  { %s264_s21 = scalar_lea.vmem %s17_s13, 1024  ;;  %p269_p4 = scmp.lt.s32.totalorder %s17_s13, %s17_s13 }
   0x8   :  { %p265_p3 = scmp.ne.s32.totalorder %s17_s13, %s264_s21  ;;  %p270_p5 = scmp.lt.s32.totalorder %s264_s21, %s264_s21 }
   0xa   :  { %p271_p6 = por %p270_p5, %p269_p4 }
   0xc   :  { %p272_p7 = pnand %p271_p6, %p265_p3 }
   0xe   :  { %275 = shalt.err (!%p272_p7)
}
   0xf   :  { %s279_s22 = smov 64   ;;  %s280_s23 = smov 4  }
  0x10   :  { %22 = dma.hbm_to_vmem [thread:$0]  %s328_s1, 1024, %s17_s13, [#allocation3], %s279_s22, %s279_s22, %s280_s23  }
  0x11   :  { %276 = dma.done.wait [#allocation3], 1024  }
  0x12   :  { %277 = vsyncadd [#allocation3], 4294966272  ;;  %v281_v0 = vmov 0.0   ;;  %vm282_vm0 = vmmov 0   ;;  %v237_v1 = vld [vmem:[#allocation2] sm:$0xff]   ;;  %v238_v2 = vld [vmem:[#allocation2 + $0x8] sm:$0xff]  }
  0x13   :  { %212 = vmatprep.subr.bf16.mxu0 %v281_v0  ;;  %228 = vmatprep.mubr.msk.bf16.mxu0 %vm282_vm0, %v281_v0  ;;  %v239_v3 = vld [vmem:[#allocation2 + $0x10] sm:$0xff]   ;;  %v240_v4 = vld [vmem:[#allocation2 + $0x18] sm:$0xff]   ;;  %v241_v5 = vld [vmem:[#allocation2 + $0x20] sm:$0xff]  }
  0x14   :  { %213 = vmatpush3.bf16.msra.mxu0 %v237_v1  ;;  %v242_v6 = vld [vmem:[#allocation2 + $0x28] sm:$0xff]   ;;  %v243_v7 = vld [vmem:[#allocation2 + $0x30] sm:$0xff]   ;;  %v244_v8 = vld [vmem:[#allocation2 + $0x38] sm:$0xff]  }
  0x15   :  { %214 = vmatprep.subr.bf16.mxu0 %v281_v0  ;;  %v245_v9 = vld [vmem:[%s327_s0] sm:$0xff]  }
  0x16   :  { %v202_v11 = vld [vmem:[%s329_s2] ss:$0 sm:$0xff] }
  0x18   :  { %215 = vmatpush3.bf16.msra.mxu0 %v238_v2 }
  0x19   :  { %216 = vmatprep.subr.bf16.mxu0 %v281_v0 }
  0x1c   :  { %217 = vmatpush3.bf16.msra.mxu0 %v239_v3 }
  0x1d   :  { %218 = vmatprep.subr.bf16.mxu0 %v281_v0 }
  0x20   :  { %219 = vmatpush3.bf16.msra.mxu0 %v240_v4 }
  0x21   :  { %220 = vmatprep.subr.bf16.mxu0 %v281_v0 }
  0x24   :  { %221 = vmatpush3.bf16.msra.mxu0 %v241_v5 }
  0x25   :  { %222 = vmatprep.subr.bf16.mxu0 %v281_v0 }
  0x28   :  { %223 = vmatpush3.bf16.msra.mxu0 %v242_v6 }
  0x29   :  { %224 = vmatprep.subr.bf16.mxu0 %v281_v0 }
  0x2c   :  { %225 = vmatpush3.bf16.msra.mxu0 %v243_v7 }
  0x2d   :  { %226 = vmatprep.subr.bf16.mxu0 %v281_v0 }
  0x30   :  { %227 = vmatpush3.bf16.msra.mxu0 %v244_v8 }
  0x33   :  { %229 = vmatmul.mubr.bf16.vlgmr.msra.gmra.mrb[0].mxu0 %v245_v9 }
 0x106   :  { %v143_v10 = vpop.f32.mrb[0].mxu0 }
 0x107   :  { %v230_v12 = vpop.f32.mrb[1].mxu0  ;;  %v166_v15 = vadd.f32 %v202_v11, %v143_v10 }
 0x108   :  { %v146_v13 = vpop.f32.mrb[2].mxu0 }
 0x109   :  { %v231_v14 = vpop.f32.mrb[3].mxu0  ;;  %168 = vmax.xlane.f32.xlu0 %v166_v15  ;;  %v167_v16 = vadd.f32 %v202_v11, %v146_v13 }
 0x10d   :  { %170 = vmax.xlane.f32.xlu0 %v167_v16 }
 0x196   :  { %v169_v17 = vpop.xlane.xlu0 %168 }
 0x197   :  { %v172_v18 = vsub.f32 %v166_v15, %v169_v17 }
 0x199   :  { %v174_v19 = vmul.f32 1.442695, %v172_v18 }
 0x19a   :  { %v171_v20 = vpop.xlane.xlu0 %170 }
 0x19b   :  { %246 = vpow2.f32 %v174_v19  ;;  %v173_v21 = vsub.f32 %v167_v16, %v171_v20 }
 0x19d   :  { %v176_v22 = vmul.f32 1.442695, %v173_v21 }
 0x19f   :  { %248 = vpow2.f32 %v176_v22 }
 0x1a5   :  { %v247_v23 = vpop.eup %246 }
 0x1a6   :  { %178 = vadd.xlane.f32.xlu1 %v247_v23 }
 0x1a9   :  { %v249_v24 = vpop.eup %248 }
 0x1aa   :  { %180 = vadd.xlane.f32.xlu1 %v249_v24 }
 0x233   :  { %v179_v25 = vpop.xlane.xlu1 %178 }
 0x234   :  { %250 = vrcp.f32 %v179_v25 }
 0x237   :  { %v181_v26 = vpop.xlane.xlu1 %180 }
 0x238   :  { %252 = vrcp.f32 %v181_v26 }
 0x23e   :  { %v251_v27 = vpop.eup %250 }
 0x23f   :  { %v183_v28 = vmul.f32 %v251_v27, %v247_v23 }
 0x241   :  { %186 = vst [vmem:[%s330_s3] sm:$0xff] %v183_v28 }
 0x242   :  { %v253_v29 = vpop.eup %252 }
 0x243   :  { %v185_v30 = vmul.f32 %v253_v29, %v249_v24 }
 0x245   :  { %187 = vst [vmem:[%s330_s3 + $0x8] sm:$0xff] %v185_v30 }
 0x246   :  { %192 = vsyncpa [#allocation3], 1 }

</bundles_post_ra>
